<compile_context>
chip_gen: v5e
topology: v5e:2x2
jax: 0.10.0
libtpu: 0.0.40
codegen_flags: <defaults>
</compile_context>

<pallas_src>
import functools

import jax
import jax.numpy as jnp
from jax import lax
from jax.experimental import pallas as pl
from jax.experimental.pallas import tpu as pltpu

VOCAB = 32000
HIDDEN = 4096

# Below this many tokens, the XLA gather is faster than a custom kernel.
_SMALL_N_FALLBACK = 512
# Keeps the scalar-prefetched (N,) int32 id vector well inside SMEM.
_MAX_TOKENS_PER_CALL = 64 * 1024


def _make_gather_kernel(token_tile: int):
    """Kernel: per grid step, gather `token_tile` embedding rows HBM->HBM."""

    def kernel(ids_ref, table_hbm, out_hbm, sems):
        # ids_ref  : SMEM (N,) int32 token ids (scalar prefetch)
        # table_hbm: raw HBM ref (VOCAB, HIDDEN)
        # out_hbm  : raw HBM ref (N, HIDDEN) — written only via DMA
        # sems     : DMA semaphores (2,) — one per in-flight tile ("slot")
        t = pl.program_id(0)
        nt = pl.num_programs(0)
        slot = t & 1
        n = out_hbm.shape[0]                      # static
        base = t * token_tile

        # Issue this tile's row gathers (table[row] -> out[g], HBM->HBM), all
        # signaling sems[slot].  Rows past the end of a ragged last tile are
        # clamped to the final valid token: they re-read/re-write identical
        # bytes, so the result is unchanged and the bulk-wait amount stays
        # exact.  (Out-of-range ids are UB, unlike torch's IndexError.)
        def issue_one(j, carry):
            g = jnp.minimum(base + j, n - 1)
            row = ids_ref[g]
            pltpu.make_async_copy(
                table_hbm.at[pl.ds(row, 1), :],
                out_hbm.at[pl.ds(g, 1), :],
                sems.at[slot],
            ).start()
            return carry

        lax.fori_loop(0, token_tile, issue_one, 0, unroll=8)

        # Bulk wait: one wait per tile.  The descriptor is (token_tile, H) of
        # the table dtype, i.e. exactly the byte sum of the token_tile (1, H)
        # row copies started above (keep these shapes in sync).
        def wait_tile(s):
            pltpu.make_async_copy(
                table_hbm.at[pl.ds(0, token_tile), :],
                table_hbm.at[pl.ds(0, token_tile), :],
                sems.at[s],
            ).wait()

        # Wait for the PREVIOUS tile (issued a full step ago on the other
        # slot): its completion latency hides behind this tile's issue.
        @pl.when(t > 0)
        def _():
            wait_tile(1 - slot)

        # Drain this tile's DMAs on the last step.
        @pl.when(t == nt - 1)
        def _():
            wait_tile(slot)

    return kernel


@functools.partial(jax.jit, static_argnames=("token_tile",))
def embedding_lookup_pallas(ids_flat: jax.Array, table: jax.Array,
                            *, token_tile: int = 256) -> jax.Array:
    """ids_flat: (N,) integer token ids; table: (V, H). Returns (N, H)."""
    n = ids_flat.shape[0]
    assert n >= 1
    _, h = table.shape
    tile = max(1, min(token_tile, n))     # don't over-issue for tiny N
    n_tiles = pl.cdiv(n, tile)
    ids = ids_flat.astype(jnp.int32)

    grid_spec = pltpu.PrefetchScalarGridSpec(
        num_scalar_prefetch=1,
        grid=(n_tiles,),
        in_specs=[
            pl.BlockSpec(memory_space=pl.ANY),    # table stays in HBM
        ],
        out_specs=pl.BlockSpec(memory_space=pl.ANY),  # gather lands directly in HBM
        scratch_shapes=[
            pltpu.SemaphoreType.DMA((2,)),            # one semaphore per slot
        ],
    )

    return pl.pallas_call(
        _make_gather_kernel(tile),
        out_shape=jax.ShapeDtypeStruct((n, h), table.dtype),
        grid_spec=grid_spec,
        compiler_params=pltpu.CompilerParams(
            # Sequential grid: step t waits on step t-1's semaphore slot.
            dimension_semantics=("arbitrary",),
        ),
    )(ids, table)


def emb_forward(x: jax.Array, table: jax.Array, *, token_tile: int = 256) -> jax.Array:
    """x: (B, S) integer ids -> (B, S, HIDDEN) embeddings."""
    b, s = x.shape
    ids_flat = x.reshape(-1).astype(jnp.int32)
    n = ids_flat.shape[0]
    if n < _SMALL_N_FALLBACK:
        # Decode-style tiny N: kernel launch overhead would dominate.
        out_flat = jnp.take(table, ids_flat, axis=0)
    elif n <= _MAX_TOKENS_PER_CALL:
        out_flat = embedding_lookup_pallas(ids_flat, table, token_tile=token_tile)
    else:
        # Chunk very long prefill so the scalar-prefetched id vector stays in SMEM.
        chunks = [
            embedding_lookup_pallas(ids_flat[i:i + _MAX_TOKENS_PER_CALL], table,
                                    token_tile=token_tile)
            for i in range(0, n, _MAX_TOKENS_PER_CALL)
        ]
        out_flat = jnp.concatenate(chunks, axis=0)
    return out_flat.reshape(b, s, table.shape[1])


if __name__ == "__main__":
    key = jax.random.PRNGKey(0)
    k_table, k_ids = jax.random.split(key)

    # Deterministic parameter init (torch.nn.Embedding default is N(0, 1)).
    table = jax.random.normal(k_table, (VOCAB, HIDDEN), dtype=jnp.float32)

    # Small input consistent with the forward: batch=2, seq=8 token ids.
    x = jax.random.randint(k_ids, (2, 8), minval=0, maxval=VOCAB, dtype=jnp.int32)
    ref = jnp.take(table, x, axis=0)

    # Pallas path with a tiny tile so the grid has >1 step, exercising the
    # cross-step double-buffered semaphore wait.
    out = embedding_lookup_pallas(x.reshape(-1), table, token_tile=8)
    out = jax.block_until_ready(out).reshape(2, 8, HIDDEN)
    assert out.shape == (2, 8, HIDDEN), out.shape
    assert out.dtype == jnp.float32, out.dtype
    assert bool(jnp.allclose(out, ref)), "mismatch vs reference gather (pallas path)"

    # Ragged N (not a multiple of token_tile) exercises the clamped last tile
    # (no out[:n] post-slice, no id padding).
    ids_r = jax.random.randint(jax.random.PRNGKey(1), (19,), 0, VOCAB, dtype=jnp.int32)
    out_r = jax.block_until_ready(embedding_lookup_pallas(ids_r, table, token_tile=8))
    ref_r = jnp.take(table, ids_r, axis=0)
    assert out_r.shape == (19, HIDDEN), out_r.shape
    assert bool(jnp.allclose(out_r, ref_r)), "mismatch vs reference gather (ragged)"

    # Module-level forward (small-N fast path -> XLA gather).
    out_fwd = jax.block_until_ready(emb_forward(x, table))
    assert bool(jnp.allclose(out_fwd, ref)), "mismatch vs reference gather (forward)"

    print("KERNEL_OK")
</pallas_src>

<mosaic_0001>
module attributes {stable_mosaic.version = 11 : i64} {
  func.func @kernel(%arg0: i32, %arg1: memref<16xi32, #tpu.memory_space<smem>>, %arg2: memref<32000x4096xf32, #tpu.memory_space<any>>, %arg3: memref<16x4096xf32, #tpu.memory_space<any>>, %arg4: memref<2x!tpu.dma_semaphore, #tpu.memory_space<semaphore_mem>>) attributes {dimension_semantics = [#tpu.dimension_semantics<arbitrary>], iteration_bounds = array<i64: 2>, scalar_prefetch = 1 : i64, scratch_operands = 1 : i64, tpu.core_type = #tpu.core_type<tc>, window_params = [{}, {}]} {
    %c1_i32 = arith.constant 1 : i32
    %0 = arith.andi %arg0, %c1_i32 : i32
    %c8_i32 = arith.constant 8 : i32
    %1 = arith.muli %arg0, %c8_i32 : i32
    %c0_i32 = arith.constant 0 : i32
    %2 = arith.addi %1, %c0_i32 : i32
    %c15_i32 = arith.constant 15 : i32
    %3 = arith.minsi %2, %c15_i32 : i32
    %4 = arith.index_cast %3 : i32 to index
    %5 = memref.load %arg1[%4] : memref<16xi32, #tpu.memory_space<smem>>
    %c0_i32_0 = arith.constant 0 : i32
    %6 = tpu.memref_slice %arg2[%5, %c0_i32_0] : memref<32000x4096xf32, #tpu.memory_space<any>> -> memref<1x4096xf32, #tpu.memory_space<any>>
    %c0_i32_1 = arith.constant 0 : i32
    %7 = tpu.memref_slice %arg3[%3, %c0_i32_1] : memref<16x4096xf32, #tpu.memory_space<any>> -> memref<1x4096xf32, #tpu.memory_space<any>>
    %8 = tpu.memref_slice %arg4[%0] : memref<2x!tpu.dma_semaphore, #tpu.memory_space<semaphore_mem>> -> memref<1x!tpu.dma_semaphore, #tpu.memory_space<semaphore_mem>>
    %9 = tpu.memref_squeeze %8 : memref<1x!tpu.dma_semaphore, #tpu.memory_space<semaphore_mem>> -> memref<!tpu.dma_semaphore, #tpu.memory_space<semaphore_mem>>
    tpu.enqueue_dma source(%6 : memref<1x4096xf32, #tpu.memory_space<any>>) target(%7 : memref<1x4096xf32, #tpu.memory_space<any>>) target_semaphore(%9 : memref<!tpu.dma_semaphore, #tpu.memory_space<semaphore_mem>>)
    %c1_i32_2 = arith.constant 1 : i32
    %10 = arith.addi %1, %c1_i32_2 : i32
    %c15_i32_3 = arith.constant 15 : i32
    %11 = arith.minsi %10, %c15_i32_3 : i32
    %12 = arith.index_cast %11 : i32 to index
    %13 = memref.load %arg1[%12] : memref<16xi32, #tpu.memory_space<smem>>
    %c0_i32_4 = arith.constant 0 : i32
    %14 = tpu.memref_slice %arg2[%13, %c0_i32_4] : memref<32000x4096xf32, #tpu.memory_space<any>> -> memref<1x4096xf32, #tpu.memory_space<any>>
    %c0_i32_5 = arith.constant 0 : i32
    %15 = tpu.memref_slice %arg3[%11, %c0_i32_5] : memref<16x4096xf32, #tpu.memory_space<any>> -> memref<1x4096xf32, #tpu.memory_space<any>>
    %16 = tpu.memref_slice %arg4[%0] : memref<2x!tpu.dma_semaphore, #tpu.memory_space<semaphore_mem>> -> memref<1x!tpu.dma_semaphore, #tpu.memory_space<semaphore_mem>>
    %17 = tpu.memref_squeeze %16 : memref<1x!tpu.dma_semaphore, #tpu.memory_space<semaphore_mem>> -> memref<!tpu.dma_semaphore, #tpu.memory_space<semaphore_mem>>
    tpu.enqueue_dma source(%14 : memref<1x4096xf32, #tpu.memory_space<any>>) target(%15 : memref<1x4096xf32, #tpu.memory_space<any>>) target_semaphore(%17 : memref<!tpu.dma_semaphore, #tpu.memory_space<semaphore_mem>>)
    %c2_i32 = arith.constant 2 : i32
    %18 = arith.addi %1, %c2_i32 : i32
    %c15_i32_6 = arith.constant 15 : i32
    %19 = arith.minsi %18, %c15_i32_6 : i32
    %20 = arith.index_cast %19 : i32 to index
    %21 = memref.load %arg1[%20] : memref<16xi32, #tpu.memory_space<smem>>
    %c0_i32_7 = arith.constant 0 : i32
    %22 = tpu.memref_slice %arg2[%21, %c0_i32_7] : memref<32000x4096xf32, #tpu.memory_space<any>> -> memref<1x4096xf32, #tpu.memory_space<any>>
    %c0_i32_8 = arith.constant 0 : i32
    %23 = tpu.memref_slice %arg3[%19, %c0_i32_8] : memref<16x4096xf32, #tpu.memory_space<any>> -> memref<1x4096xf32, #tpu.memory_space<any>>
    %24 = tpu.memref_slice %arg4[%0] : memref<2x!tpu.dma_semaphore, #tpu.memory_space<semaphore_mem>> -> memref<1x!tpu.dma_semaphore, #tpu.memory_space<semaphore_mem>>
    %25 = tpu.memref_squeeze %24 : memref<1x!tpu.dma_semaphore, #tpu.memory_space<semaphore_mem>> -> memref<!tpu.dma_semaphore, #tpu.memory_space<semaphore_mem>>
    tpu.enqueue_dma source(%22 : memref<1x4096xf32, #tpu.memory_space<any>>) target(%23 : memref<1x4096xf32, #tpu.memory_space<any>>) target_semaphore(%25 : memref<!tpu.dma_semaphore, #tpu.memory_space<semaphore_mem>>)
    %c3_i32 = arith.constant 3 : i32
    %26 = arith.addi %1, %c3_i32 : i32
    %c15_i32_9 = arith.constant 15 : i32
    %27 = arith.minsi %26, %c15_i32_9 : i32
    %28 = arith.index_cast %27 : i32 to index
    %29 = memref.load %arg1[%28] : memref<16xi32, #tpu.memory_space<smem>>
    %c0_i32_10 = arith.constant 0 : i32
    %30 = tpu.memref_slice %arg2[%29, %c0_i32_10] : memref<32000x4096xf32, #tpu.memory_space<any>> -> memref<1x4096xf32, #tpu.memory_space<any>>
    %c0_i32_11 = arith.constant 0 : i32
    %31 = tpu.memref_slice %arg3[%27, %c0_i32_11] : memref<16x4096xf32, #tpu.memory_space<any>> -> memref<1x4096xf32, #tpu.memory_space<any>>
    %32 = tpu.memref_slice %arg4[%0] : memref<2x!tpu.dma_semaphore, #tpu.memory_space<semaphore_mem>> -> memref<1x!tpu.dma_semaphore, #tpu.memory_space<semaphore_mem>>
    %33 = tpu.memref_squeeze %32 : memref<1x!tpu.dma_semaphore, #tpu.memory_space<semaphore_mem>> -> memref<!tpu.dma_semaphore, #tpu.memory_space<semaphore_mem>>
    tpu.enqueue_dma source(%30 : memref<1x4096xf32, #tpu.memory_space<any>>) target(%31 : memref<1x4096xf32, #tpu.memory_space<any>>) target_semaphore(%33 : memref<!tpu.dma_semaphore, #tpu.memory_space<semaphore_mem>>)
    %c4_i32 = arith.constant 4 : i32
    %34 = arith.addi %1, %c4_i32 : i32
    %c15_i32_12 = arith.constant 15 : i32
    %35 = arith.minsi %34, %c15_i32_12 : i32
    %36 = arith.index_cast %35 : i32 to index
    %37 = memref.load %arg1[%36] : memref<16xi32, #tpu.memory_space<smem>>
    %c0_i32_13 = arith.constant 0 : i32
    %38 = tpu.memref_slice %arg2[%37, %c0_i32_13] : memref<32000x4096xf32, #tpu.memory_space<any>> -> memref<1x4096xf32, #tpu.memory_space<any>>
    %c0_i32_14 = arith.constant 0 : i32
    %39 = tpu.memref_slice %arg3[%35, %c0_i32_14] : memref<16x4096xf32, #tpu.memory_space<any>> -> memref<1x4096xf32, #tpu.memory_space<any>>
    %40 = tpu.memref_slice %arg4[%0] : memref<2x!tpu.dma_semaphore, #tpu.memory_space<semaphore_mem>> -> memref<1x!tpu.dma_semaphore, #tpu.memory_space<semaphore_mem>>
    %41 = tpu.memref_squeeze %40 : memref<1x!tpu.dma_semaphore, #tpu.memory_space<semaphore_mem>> -> memref<!tpu.dma_semaphore, #tpu.memory_space<semaphore_mem>>
    tpu.enqueue_dma source(%38 : memref<1x4096xf32, #tpu.memory_space<any>>) target(%39 : memref<1x4096xf32, #tpu.memory_space<any>>) target_semaphore(%41 : memref<!tpu.dma_semaphore, #tpu.memory_space<semaphore_mem>>)
    %c5_i32 = arith.constant 5 : i32
    %42 = arith.addi %1, %c5_i32 : i32
    %c15_i32_15 = arith.constant 15 : i32
    %43 = arith.minsi %42, %c15_i32_15 : i32
    %44 = arith.index_cast %43 : i32 to index
    %45 = memref.load %arg1[%44] : memref<16xi32, #tpu.memory_space<smem>>
    %c0_i32_16 = arith.constant 0 : i32
    %46 = tpu.memref_slice %arg2[%45, %c0_i32_16] : memref<32000x4096xf32, #tpu.memory_space<any>> -> memref<1x4096xf32, #tpu.memory_space<any>>
    %c0_i32_17 = arith.constant 0 : i32
    %47 = tpu.memref_slice %arg3[%43, %c0_i32_17] : memref<16x4096xf32, #tpu.memory_space<any>> -> memref<1x4096xf32, #tpu.memory_space<any>>
    %48 = tpu.memref_slice %arg4[%0] : memref<2x!tpu.dma_semaphore, #tpu.memory_space<semaphore_mem>> -> memref<1x!tpu.dma_semaphore, #tpu.memory_space<semaphore_mem>>
    %49 = tpu.memref_squeeze %48 : memref<1x!tpu.dma_semaphore, #tpu.memory_space<semaphore_mem>> -> memref<!tpu.dma_semaphore, #tpu.memory_space<semaphore_mem>>
    tpu.enqueue_dma source(%46 : memref<1x4096xf32, #tpu.memory_space<any>>) target(%47 : memref<1x4096xf32, #tpu.memory_space<any>>) target_semaphore(%49 : memref<!tpu.dma_semaphore, #tpu.memory_space<semaphore_mem>>)
    %c6_i32 = arith.constant 6 : i32
    %50 = arith.addi %1, %c6_i32 : i32
    %c15_i32_18 = arith.constant 15 : i32
    %51 = arith.minsi %50, %c15_i32_18 : i32
    %52 = arith.index_cast %51 : i32 to index
    %53 = memref.load %arg1[%52] : memref<16xi32, #tpu.memory_space<smem>>
    %c0_i32_19 = arith.constant 0 : i32
    %54 = tpu.memref_slice %arg2[%53, %c0_i32_19] : memref<32000x4096xf32, #tpu.memory_space<any>> -> memref<1x4096xf32, #tpu.memory_space<any>>
    %c0_i32_20 = arith.constant 0 : i32
    %55 = tpu.memref_slice %arg3[%51, %c0_i32_20] : memref<16x4096xf32, #tpu.memory_space<any>> -> memref<1x4096xf32, #tpu.memory_space<any>>
    %56 = tpu.memref_slice %arg4[%0] : memref<2x!tpu.dma_semaphore, #tpu.memory_space<semaphore_mem>> -> memref<1x!tpu.dma_semaphore, #tpu.memory_space<semaphore_mem>>
    %57 = tpu.memref_squeeze %56 : memref<1x!tpu.dma_semaphore, #tpu.memory_space<semaphore_mem>> -> memref<!tpu.dma_semaphore, #tpu.memory_space<semaphore_mem>>
    tpu.enqueue_dma source(%54 : memref<1x4096xf32, #tpu.memory_space<any>>) target(%55 : memref<1x4096xf32, #tpu.memory_space<any>>) target_semaphore(%57 : memref<!tpu.dma_semaphore, #tpu.memory_space<semaphore_mem>>)
    %c7_i32 = arith.constant 7 : i32
    %58 = arith.addi %1, %c7_i32 : i32
    %c15_i32_21 = arith.constant 15 : i32
    %59 = arith.minsi %58, %c15_i32_21 : i32
    %60 = arith.index_cast %59 : i32 to index
    %61 = memref.load %arg1[%60] : memref<16xi32, #tpu.memory_space<smem>>
    %c0_i32_22 = arith.constant 0 : i32
    %62 = tpu.memref_slice %arg2[%61, %c0_i32_22] : memref<32000x4096xf32, #tpu.memory_space<any>> -> memref<1x4096xf32, #tpu.memory_space<any>>
    %c0_i32_23 = arith.constant 0 : i32
    %63 = tpu.memref_slice %arg3[%59, %c0_i32_23] : memref<16x4096xf32, #tpu.memory_space<any>> -> memref<1x4096xf32, #tpu.memory_space<any>>
    %64 = tpu.memref_slice %arg4[%0] : memref<2x!tpu.dma_semaphore, #tpu.memory_space<semaphore_mem>> -> memref<1x!tpu.dma_semaphore, #tpu.memory_space<semaphore_mem>>
    %65 = tpu.memref_squeeze %64 : memref<1x!tpu.dma_semaphore, #tpu.memory_space<semaphore_mem>> -> memref<!tpu.dma_semaphore, #tpu.memory_space<semaphore_mem>>
    tpu.enqueue_dma source(%62 : memref<1x4096xf32, #tpu.memory_space<any>>) target(%63 : memref<1x4096xf32, #tpu.memory_space<any>>) target_semaphore(%65 : memref<!tpu.dma_semaphore, #tpu.memory_space<semaphore_mem>>)
    %c8_i32_24 = arith.constant 8 : i32
    %c0_i32_25 = arith.constant 0 : i32
    %66 = arith.cmpi sgt, %arg0, %c0_i32_25 : i32
    %67 = arith.extui %66 : i1 to i32
    %c0_i32_26 = arith.constant 0 : i32
    %68 = arith.cmpi ne, %67, %c0_i32_26 : i32
    scf.if %68 {
      %c1_i32_29 = arith.constant 1 : i32
      %72 = arith.subi %c1_i32_29, %0 : i32
      %c0_i32_30 = arith.constant 0 : i32
      %c0_i32_31 = arith.constant 0 : i32
      %73 = tpu.memref_slice %arg2[%c0_i32_30, %c0_i32_31] : memref<32000x4096xf32, #tpu.memory_space<any>> -> memref<8x4096xf32, #tpu.memory_space<any>>
      %c0_i32_32 = arith.constant 0 : i32
      %c0_i32_33 = arith.constant 0 : i32
      %74 = tpu.memref_slice %arg2[%c0_i32_32, %c0_i32_33] : memref<32000x4096xf32, #tpu.memory_space<any>> -> memref<8x4096xf32, #tpu.memory_space<any>>
      %75 = tpu.memref_slice %arg4[%72] : memref<2x!tpu.dma_semaphore, #tpu.memory_space<semaphore_mem>> -> memref<1x!tpu.dma_semaphore, #tpu.memory_space<semaphore_mem>>
      %76 = tpu.memref_squeeze %75 : memref<1x!tpu.dma_semaphore, #tpu.memory_space<semaphore_mem>> -> memref<!tpu.dma_semaphore, #tpu.memory_space<semaphore_mem>>
      tpu.wait_dma2 semaphore(%76 : memref<!tpu.dma_semaphore, #tpu.memory_space<semaphore_mem>>) src(%73 : memref<8x4096xf32, #tpu.memory_space<any>>) dst(%74 : memref<8x4096xf32, #tpu.memory_space<any>>)
    } else {
    }
    %c1_i32_27 = arith.constant 1 : i32
    %69 = arith.cmpi eq, %arg0, %c1_i32_27 : i32
    %70 = arith.extui %69 : i1 to i32
    %c0_i32_28 = arith.constant 0 : i32
    %71 = arith.cmpi ne, %70, %c0_i32_28 : i32
    scf.if %71 {
      %c0_i32_29 = arith.constant 0 : i32
      %c0_i32_30 = arith.constant 0 : i32
      %72 = tpu.memref_slice %arg2[%c0_i32_29, %c0_i32_30] : memref<32000x4096xf32, #tpu.memory_space<any>> -> memref<8x4096xf32, #tpu.memory_space<any>>
      %c0_i32_31 = arith.constant 0 : i32
      %c0_i32_32 = arith.constant 0 : i32
      %73 = tpu.memref_slice %arg2[%c0_i32_31, %c0_i32_32] : memref<32000x4096xf32, #tpu.memory_space<any>> -> memref<8x4096xf32, #tpu.memory_space<any>>
      %74 = tpu.memref_slice %arg4[%0] : memref<2x!tpu.dma_semaphore, #tpu.memory_space<semaphore_mem>> -> memref<1x!tpu.dma_semaphore, #tpu.memory_space<semaphore_mem>>
      %75 = tpu.memref_squeeze %74 : memref<1x!tpu.dma_semaphore, #tpu.memory_space<semaphore_mem>> -> memref<!tpu.dma_semaphore, #tpu.memory_space<semaphore_mem>>
      tpu.wait_dma2 semaphore(%75 : memref<!tpu.dma_semaphore, #tpu.memory_space<semaphore_mem>>) src(%72 : memref<8x4096xf32, #tpu.memory_space<any>>) dst(%73 : memref<8x4096xf32, #tpu.memory_space<any>>)
    } else {
    }
    return
  }
}

</mosaic_0001>

<bundles_post_ra>
// kernel: embedding_lookup_pallas.1
= control target key start
LH: loop header
LB: loop body
LE: loop exit
PB: predicated region body
PF: predicated region fallthrough
CT: control target
= control target key end

     0   :  { %s443_s12 = smov [#allocation4]   ;;  %s595_s0 = inlined_call_operand.hbm [shape: s32[16], index: 0, kind: input, shape index: {}]   ;;  %s596_s1 = inlined_call_operand.hbm [shape: f32[32000,4096], index: 1, kind: input, shape index: {}]   ;;  %s597_s2 = inlined_call_operand.hbm [shape: f32[16,4096], index: 2, kind: output, shape index: {}]  }
   0x1   :  { %s8_s11 = sshll.u32 %s595_s0, 4  ;;  %s9_s11 = int_to_ptr.hbm [resolvable:$true] %s8_s11 }
   0x2   :  { %11 = dma.hbm_to_smem %s9_s11, 16, %s443_s12, [#allocation3] }
   0x3   :  { %429 = dma.done.wait [#allocation3], 16 }
   0x4   :  { %430 = vsyncadd [#allocation3], 4294967280 }
   0x5   :  { %14 = sfence }
   0x6   :  { %s473_s13 = smov 0  }
   0x7 LB: > { %s22_s14 = sand.u32 1, %s441_s13  ;;  %s480_s15 = sshll.u32 %s441_s13, 3  ;;  %s441_s13 = sphi %s473_s13, %s20_s13  }
   0x8   : > { %p24_p0 = scmp.lt.s32.totalorder %s480_s15, 15  ;;  %s444_s16 = smov 128  }
   0x9   : > { %49 = sst [smem:[#allocation6]] %s444_s16  ;;  %s445_s25 = smov 1  }
   0xa   : > { %s25_s0 = scalar_select %p24_p0, %s480_s15, 15 }
   0xb   : > { %51 = sst [smem:[#allocation6 + $0x1]] %s444_s16  ;;  %s56_s27 = sadd.s32 1, %s480_s15 }
   0xc   : > { %s26_s17 = sld [smem:[#allocation4 + %s25_s0]]  ;;  %s32_s18 = sshrl.u32 %s25_s0, 3 }
   0xd   : > { %s33_s19 = sand.u32 7, %s25_s0   ;;  %s368_s20 = sshll.u32 %s32_s18, 8 }
   0xe   : > { %s35_s21 = sadd.s32 %s368_s20, %s33_s19  ;;  %53 = sst [smem:[#allocation6 + $0x2]] %s445_s25 }
   0xf   : > { %s36_s24 = scalar_lea.hbm %s597_s2, %s35_s21  ;;  %p57_p1 = scmp.lt.s32.totalorder %s56_s27, 15 }
  0x10   : > { %s44_s26 = sshll.u32 %s36_s24, 4  ;;  %s491_s4 = ssub.s32 1, %s22_s14  ;;  %s45_s26 = int_to_ptr.hbm [resolvable:$true] %s44_s26 }
  0x11   : > { %s496_s9 = scalar_lea.sflag [#allocation2], %s22_s14  ;;  %s446_s10 = smov [#allocation5]  }
  0x12   : > { %s27_s28 = sshrl.u32 %s26_s17, 3  ;;  %s28_s29 = sand.u32 7, %s26_s17  }
  0x13   : > { %s367_s30 = sshll.u32 %s27_s28, 8  ;;  %s447_s11 = smov 0  }
  0x14   : > { %s30_s3 = sadd.s32 %s367_s30, %s28_s29  ;;  %s599_s27 = smov (!%p57_p1, %s56_s27), 15 }
  0x15   : > { %s31_s7 = scalar_lea.hbm %s596_s1, %s30_s3  ;;  %s65_s0 = sshrl.u32 %s599_s27, 3 }
  0x16   : > { %s42_s8 = sshll.u32 %s31_s7, 4  ;;  %s66_s17 = sand.u32 7, %s599_s27   ;;  %s43_s8 = int_to_ptr.hbm [resolvable:$true] %s42_s8 }
  0x17   : > { %55 = dma.general %s43_s8, 512, %s45_s26, %s496_s9, %s446_s10, [#allocation6], %s447_s11, 0  }
  0x18   : > { %81 = sst [smem:[#allocation8]] %s444_s16  ;;  %s370_s18 = sshll.u32 %s65_s0, 8 }
  0x19   : > { %s59_s12 = sld [smem:[#allocation4 + %s599_s27]]  ;;  %s68_s19 = sadd.s32 %s370_s18, %s66_s17 }
  0x1a   : > { %83 = sst [smem:[#allocation8 + $0x1]] %s444_s16  ;;  %s69_s14 = scalar_lea.hbm %s597_s2, %s68_s19 }
  0x1b   : > { %85 = sst [smem:[#allocation8 + $0x2]] %s445_s25  ;;  %s76_s22 = sshll.u32 %s69_s14, 4  ;;  %s77_s22 = int_to_ptr.hbm [resolvable:$true] %s76_s22 }
  0x1c   : > { %s88_s23 = sadd.s32 2, %s480_s15  ;;  %s448_s6 = smov [#allocation7]  }
  0x1d   : > { %p89_p2 = scmp.lt.s32.totalorder %s88_s23, 15  ;;  %s120_s21 = sadd.s32 3, %s480_s15 }
  0x1e   : > { %p121_p3 = scmp.lt.s32.totalorder %s120_s21, 15  ;;  %s449_s27 = smov [#allocation9]  }
  0x1f   : > { %s60_s24 = sshrl.u32 %s59_s12, 3  ;;  %s61_s26 = sand.u32 7, %s59_s12  }
  0x20   : > { %s369_s28 = sshll.u32 %s60_s24, 8  ;;  %s601_s23 = smov (!%p89_p2, %s88_s23), 15 }
  0x21   : > { %s63_s29 = sadd.s32 %s369_s28, %s61_s26  ;;  %s97_s8 = sshrl.u32 %s601_s23, 3 }
  0x22   : > { %s64_s3 = scalar_lea.hbm %s596_s1, %s63_s29  ;;  %s98_s10 = sand.u32 7, %s601_s23  }
  0x23   : > { %s74_s5 = sshll.u32 %s64_s3, 4  ;;  %s372_s12 = sshll.u32 %s97_s8, 8  ;;  %s75_s5 = int_to_ptr.hbm [resolvable:$true] %s74_s5 }
  0x24   : > { %87 = dma.general %s75_s5, 512, %s77_s22, %s496_s9, %s448_s6, [#allocation8], %s447_s11, 0  }
  0x25   : > { %113 = sst [smem:[#allocation10]] %s444_s16  ;;  %s100_s0 = sadd.s32 %s372_s12, %s98_s10 }
  0x26   : > { %s91_s7 = sld [smem:[#allocation4 + %s601_s23]]  ;;  %s101_s19 = scalar_lea.hbm %s597_s2, %s100_s0 }
  0x27   : > { %115 = sst [smem:[#allocation10 + $0x1]] %s444_s16  ;;  %s108_s20 = sshll.u32 %s101_s19, 4  ;;  %s109_s20 = int_to_ptr.hbm [resolvable:$true] %s108_s20 }
  0x28   : > { %117 = sst [smem:[#allocation10 + $0x2]] %s445_s25  ;;  %s603_s21 = smov (!%p121_p3, %s120_s21), 15 }
  0x29   : > { %s129_s5 = sshrl.u32 %s603_s21, 3  ;;  %s130_s6 = sand.u32 7, %s603_s21  }
  0x2a   : > { %s152_s17 = sadd.s32 4, %s480_s15  ;;  %p391_p4 = scmp.gt.s32.totalorder %s441_s13, 0 }
  0x2b   : > { %p153_p5 = scmp.lt.s32.totalorder %s152_s17, 15  ;;  %s450_s23 = smov [#allocation11]  }
  0x2c   : > { %s92_s14 = sshrl.u32 %s91_s7, 3  ;;  %s93_s22 = sand.u32 7, %s91_s7  }
  0x2d   : > { %s371_s24 = sshll.u32 %s92_s14, 8  ;;  %s374_s7 = sshll.u32 %s129_s5, 8 }
  0x2e   : > { %s95_s26 = sadd.s32 %s371_s24, %s93_s22  ;;  %s132_s8 = sadd.s32 %s374_s7, %s130_s6 }
  0x2f   : > { %s96_s29 = scalar_lea.hbm %s596_s1, %s95_s26  ;;  %s133_s0 = scalar_lea.hbm %s597_s2, %s132_s8 }
  0x30   : > { %s106_s30 = sshll.u32 %s96_s29, 4  ;;  %s140_s18 = sshll.u32 %s133_s0, 4  ;;  %s107_s30 = int_to_ptr.hbm [resolvable:$true] %s106_s30  ;;  %s141_s18 = int_to_ptr.hbm [resolvable:$true] %s140_s18 }
  0x31   : > { %119 = dma.general %s107_s30, 512, %s109_s20, %s496_s9, %s449_s27, [#allocation10], %s447_s11, 0  }
  0x32   : > { %145 = sst [smem:[#allocation12]] %s444_s16  ;;  %s605_s17 = smov (!%p153_p5, %s152_s17), 15 }
  0x33   : > { %s123_s3 = sld [smem:[#allocation4 + %s603_s21]]  ;;  %s161_s30 = sshrl.u32 %s605_s17, 3 }
  0x34   : > { %147 = sst [smem:[#allocation12 + $0x1]] %s444_s16  ;;  %s162_s27 = sand.u32 7, %s605_s17  }
  0x35   : > { %149 = sst [smem:[#allocation12 + $0x2]] %s445_s25  ;;  %s184_s12 = sadd.s32 5, %s480_s15 }
  0x36   : > { %p185_p6 = scmp.lt.s32.totalorder %s184_s12, 15  ;;  %s451_s24 = smov [#allocation13]  }
  0x37   : > { %s216_s7 = sadd.s32 6, %s480_s15 }
  0x38   : > { %s607_s12 = smov (!%p185_p6, %s184_s12), 15  ;;  %p217_p7 = scmp.lt.s32.totalorder %s216_s7, 15 }
  0x39   : > { %s124_s19 = sshrl.u32 %s123_s3, 3  ;;  %s125_s20 = sand.u32 7, %s123_s3  }
  0x3a   : > { %s373_s14 = sshll.u32 %s124_s19, 8  ;;  %s376_s3 = sshll.u32 %s161_s30, 8 }
  0x3b   : > { %s127_s22 = sadd.s32 %s373_s14, %s125_s20  ;;  %s164_s5 = sadd.s32 %s376_s3, %s162_s27 }
  0x3c   : > { %s128_s26 = scalar_lea.hbm %s596_s1, %s127_s22  ;;  %s165_s8 = scalar_lea.hbm %s597_s2, %s164_s5 }
  0x3d   : > { %s138_s28 = sshll.u32 %s128_s26, 4  ;;  %s172_s10 = sshll.u32 %s165_s8, 4  ;;  %s139_s28 = int_to_ptr.hbm [resolvable:$true] %s138_s28  ;;  %s173_s10 = int_to_ptr.hbm [resolvable:$true] %s172_s10 }
  0x3e   : > { %151 = dma.general %s139_s28, 512, %s141_s18, %s496_s9, %s450_s23, [#allocation12], %s447_s11, 0  }
  0x3f   : > { %177 = sst [smem:[#allocation14]] %s444_s16  ;;  %s193_s28 = sshrl.u32 %s607_s12, 3 }
  0x40   : > { %s155_s29 = sld [smem:[#allocation4 + %s605_s17]]  ;;  %s194_s23 = sand.u32 7, %s607_s12  }
  0x41   : > { %179 = sst [smem:[#allocation14 + $0x1]] %s444_s16  ;;  %s452_s17 = smov [#allocation15]  }
  0x42   : > { %181 = sst [smem:[#allocation14 + $0x2]] %s445_s25  ;;  %s609_s7 = smov (!%p217_p7, %s216_s7), 15 }
  0x43   : > { %s248_s3 = sadd.s32 7, %s480_s15 }
  0x44   : > { %p249_p8 = scmp.lt.s32.totalorder %s248_s3, 15 }
  0x46   : > { %s156_s0 = sshrl.u32 %s155_s29, 3  ;;  %s157_s18 = sand.u32 7, %s155_s29  }
  0x47   : > { %s375_s19 = sshll.u32 %s156_s0, 8  ;;  %s378_s29 = sshll.u32 %s193_s28, 8 }
  0x48   : > { %s159_s20 = sadd.s32 %s375_s19, %s157_s18  ;;  %s196_s30 = sadd.s32 %s378_s29, %s194_s23 }
  0x49   : > { %s160_s22 = scalar_lea.hbm %s596_s1, %s159_s20  ;;  %s197_s5 = scalar_lea.hbm %s597_s2, %s196_s30 }
  0x4a   : > { %s170_s21 = sshll.u32 %s160_s22, 4  ;;  %s204_s6 = sshll.u32 %s197_s5, 4  ;;  %s171_s21 = int_to_ptr.hbm [resolvable:$true] %s170_s21  ;;  %s205_s6 = int_to_ptr.hbm [resolvable:$true] %s204_s6 }
  0x4b   : > { %183 = dma.general %s171_s21, 512, %s173_s10, %s496_s9, %s451_s24, [#allocation14], %s447_s11, 0  }
  0x4c   : > { %209 = sst [smem:[#allocation16]] %s444_s16  ;;  %s225_s21 = sshrl.u32 %s609_s7, 3 }
  0x4d   : > { %s187_s26 = sld [smem:[#allocation4 + %s607_s12]]  ;;  %s226_s24 = sand.u32 7, %s609_s7  }
  0x4e   : > { %211 = sst [smem:[#allocation16 + $0x1]] %s444_s16  ;;  %s453_s12 = smov [#allocation17]  }
  0x4f   : > { %213 = sst [smem:[#allocation16 + $0x2]] %s445_s25  ;;  %s611_s3 = smov (!%p249_p8, %s248_s3), 15 }
  0x50   : > { %s257_s15 = sshrl.u32 %s611_s3, 3 }
  0x53   : > { %s188_s8 = sshrl.u32 %s187_s26, 3  ;;  %s189_s10 = sand.u32 7, %s187_s26  }
  0x54   : > { %s377_s0 = sshll.u32 %s188_s8, 8  ;;  %s380_s26 = sshll.u32 %s225_s21, 8 }
  0x55   : > { %s191_s18 = sadd.s32 %s377_s0, %s189_s10  ;;  %s228_s28 = sadd.s32 %s380_s26, %s226_s24 }
  0x56   : > { %s192_s20 = scalar_lea.hbm %s596_s1, %s191_s18  ;;  %s229_s30 = scalar_lea.hbm %s597_s2, %s228_s28 }
  0x57   : > { %s202_s14 = sshll.u32 %s192_s20, 4  ;;  %s236_s27 = sshll.u32 %s229_s30, 4  ;;  %s203_s14 = int_to_ptr.hbm [resolvable:$true] %s202_s14  ;;  %s237_s27 = int_to_ptr.hbm [resolvable:$true] %s236_s27 }
  0x58   : > { %215 = dma.general %s203_s14, 512, %s205_s6, %s496_s9, %s452_s17, [#allocation16], %s447_s11, 0  }
  0x59   : > { %241 = sst [smem:[#allocation18]] %s444_s16  ;;  %s258_s14 = sand.u32 7, %s611_s3  }
  0x5a   : > { %s219_s22 = sld [smem:[#allocation4 + %s609_s7]]  ;;  %s382_s17 = sshll.u32 %s257_s15, 8 }
  0x5b   : > { %243 = sst [smem:[#allocation18 + $0x1]] %s444_s16 }
  0x5c   : > { %245 = sst [smem:[#allocation18 + $0x2]] %s445_s25 }
  0x60   : > { %s220_s5 = sshrl.u32 %s219_s22, 3  ;;  %s221_s6 = sand.u32 7, %s219_s22  }
  0x61   : > { %s379_s8 = sshll.u32 %s220_s5, 8  ;;  %s260_s22 = sadd.s32 %s382_s17, %s258_s14 }
  0x62   : > { %s223_s10 = sadd.s32 %s379_s8, %s221_s6  ;;  %s261_s26 = scalar_lea.hbm %s597_s2, %s260_s22 }
  0x63   : > { %s224_s18 = scalar_lea.hbm %s596_s1, %s223_s10  ;;  %s268_s28 = sshll.u32 %s261_s26, 4  ;;  %s269_s28 = int_to_ptr.hbm [resolvable:$true] %s268_s28 }
  0x64   : > { %s234_s19 = sshll.u32 %s224_s18, 4  ;;  %s454_s10 = smov [#allocation19]   ;;  %s235_s19 = int_to_ptr.hbm [resolvable:$true] %s234_s19 }
  0x65   : > { %247 = dma.general %s235_s19, 512, %s237_s27, %s496_s9, %s453_s12, [#allocation18], %s447_s11, 0  }
  0x66   : > { %273 = sst [smem:[#allocation20]] %s444_s16 }
  0x67   : > { %s251_s20 = sld [smem:[#allocation4 + %s611_s3]] }
  0x68   : > { %275 = sst [smem:[#allocation20 + $0x1]] %s444_s16  ;;  %s285_s16 = scalar_lea.sflag [#allocation2], %s491_s4 }
  0x69   : > { %277 = sst [smem:[#allocation20 + $0x2]] %s445_s25 }
  0x6d   : > { %s252_s23 = sshrl.u32 %s251_s20, 3  ;;  %s253_s29 = sand.u32 7, %s251_s20  }
  0x6e   : > { %s381_s30 = sshll.u32 %s252_s23, 8 }
  0x6f   : > { %s255_s27 = sadd.s32 %s381_s30, %s253_s29 }
  0x70   : > { %s256_s6 = scalar_lea.hbm %s596_s1, %s255_s27 }
  0x71   : > { %s266_s8 = sshll.u32 %s256_s6, 4  ;;  %s267_s8 = int_to_ptr.hbm [resolvable:$true] %s266_s8 }
  0x72   : > { %279 = dma.general %s267_s8, 512, %s269_s28, %s496_s9, %s454_s10, [#allocation20], %s447_s11, 0  }
  0x73   : > { %432 = dma.done.wait (%p391_p4), %s285_s16, 4096 }
  0x74   : > { %434 = vsyncadd (%p391_p4), %s285_s16, 4294963200  ;;  %p392_p9 = scmp.eq.s32.totalorder %s441_s13, 1 }
  0x76   : > { %436 = dma.done.wait (%p392_p9), %s496_s9, 4096 }
  0x77   : > { %438 = vsyncadd (%p392_p9), %s496_s9, 4294963200  ;;  %s20_s13 = sadd.s32 1, %s441_s13  }
  0x78   : > { %p17_p10 = scmp.ge.s32.totalorder %s20_s13, 2  }
  0x7a   :  { %19 = sbr.rel (!%p17_p10) target bundleno = 7 (0x7), region = 62 }
  0x7f   :  { %298 = vsyncmov [#allocation2] }
  0x82   :  { %s299_s25 = vpop.sfrf %298 }
  0x83   :  { %p385_p11 = scmp.ne.s32.totalorder %s299_s25, 0 }
  0x85   :  { %303 = shalt.err (%p385_p11)  }
  0x86   :  { %305 = vsyncmov [#allocation2 + $0x1] }
  0x89   :  { %s306_s4 = vpop.sfrf %305 }
  0x8a   :  { %p386_p12 = scmp.ne.s32.totalorder %s306_s4, 0 }
  0x8c   :  { %310 = shalt.err (%p386_p12)  }

</bundles_post_ra>
